<compile_context>
chip_gen: v5e
topology: v5e:2x2
jax: 0.10.0
libtpu: 0.0.40
codegen_flags: <defaults>
</compile_context>

<pallas_src>
import functools
import math

import jax
import jax.numpy as jnp
from jax import lax
from jax.experimental import pallas as pl
from jax.experimental.pallas import tpu as pltpu


def _round_up(a, b):
    return ((a + b - 1) // b) * b


def _contrastive_loss_kernel(rows_ref, cols_ref, out_ref,
                             row_sum_acc, match_acc,
                             *, inv_tau, norm_sum, n, two_n, normalize, tm, tn):
    i = pl.program_id(0)   # row-block index   ("parallel")
    j = pl.program_id(1)   # col-block index   ("arbitrary" reduction axis)

    @pl.when(j == 0)
    def _init():
        row_sum_acc[...] = jnp.zeros_like(row_sum_acc)
        match_acc[...] = jnp.zeros_like(match_acc)

    a = rows_ref[...].astype(jnp.float32)            # (TM, D)
    b = cols_ref[...].astype(jnp.float32)            # (TN, D)

    if normalize:
        # Normalize rows once (O(T*D) VPU+EUP) instead of dividing the full
        # (TM,TN) sim tile by an outer product of norms.
        a = a * lax.rsqrt(jnp.maximum(jnp.sum(a * a, axis=-1, keepdims=True), 1e-32))
        b = b * lax.rsqrt(jnp.maximum(jnp.sum(b * b, axis=-1, keepdims=True), 1e-32))

    # (TM, TN) scaled similarity tile on the MXU (contract the feature axis);
    # multiply by precomputed 1/tau instead of dividing.
    s = lax.dot_general(a, b, (((1,), (1,)), ((), ())),
                        preferred_element_type=jnp.float32) * inv_tau

    row_ids = lax.broadcasted_iota(jnp.int32, (tm, tn), 0) + i * tm
    col_ids = lax.broadcasted_iota(jnp.int32, (tm, tn), 1) + j * tn

    # Row sums of exp(sim/tau), excluding zero-padded columns.
    valid = col_ids < two_n
    row_sum_acc[...] += jnp.sum(jnp.where(valid, jnp.exp(s), 0.0),
                                axis=-1, keepdims=True)

    # Positive-pair term: match[r]/tau = s[r, (r + N) mod 2N]; each row's
    # positive column lives in exactly one col block, so masked-sum accumulates it.
    pos_col = jnp.where(row_ids < n, row_ids + n, row_ids - n)
    match_acc[...] += jnp.sum(jnp.where(col_ids == pos_col, s, 0.0),
                              axis=-1, keepdims=True)

    @pl.when(j == pl.num_programs(1) - 1)
    def _finalize():
        # -log(exp(match/tau) / (row_sum - exp(1/tau)))
        #   == log(row_sum - exp(1/tau)) - match/tau
        out_ref[...] = jnp.log(row_sum_acc[...] - norm_sum) - match_acc[...]


def contrastive_loss(xi, xj, tau=1.0, normalize=False):
    """JAX/Pallas equivalent of contrastive_loss(tau, normalize).forward(xi, xj)."""
    xi = jnp.asarray(xi, jnp.float32)
    xj = jnp.asarray(xj, jnp.float32)
    n, d = xi.shape
    two_n = 2 * n

    x = jnp.concatenate([xi, xj], axis=0)            # (2N, D); xi/xj not shipped separately

    # Tile choice: 256-aligned (v6e/v7x MXU friendly, also a multiple of 128 for
    # v5e); for tiny batches fall back to a single sublane-aligned block.
    if two_n >= 256:
        tile = 256
    else:
        tile = _round_up(max(two_n, 8), 8)
    rows_padded = _round_up(two_n, tile)
    if rows_padded != two_n:
        x = jnp.pad(x, ((0, rows_padded - two_n), (0, 0)))

    n_blocks = rows_padded // tile
    grid = (n_blocks, n_blocks)                      # (row blocks, col blocks)

    kernel = functools.partial(
        _contrastive_loss_kernel,
        inv_tau=float(1.0 / tau),
        norm_sum=float(math.exp(1.0 / tau)),         # exp(1/tau), same for every row
        n=n, two_n=two_n,
        normalize=bool(normalize),
        tm=tile, tn=tile,
    )

    out = pl.pallas_call(
        kernel,
        out_shape=jax.ShapeDtypeStruct((rows_padded, 1), jnp.float32),
        grid_spec=pltpu.PrefetchScalarGridSpec(
            num_scalar_prefetch=0,
            grid=grid,
            in_specs=[
                pl.BlockSpec((tile, d), lambda i, j: (i, 0)),   # LHS row slab
                pl.BlockSpec((tile, d), lambda i, j: (j, 0)),   # RHS col slab
            ],
            out_specs=pl.BlockSpec((tile, 1), lambda i, j: (i, 0)),
            scratch_shapes=[
                pltpu.VMEM((tile, 1), jnp.float32),   # row_sum accumulator
                pltpu.VMEM((tile, 1), jnp.float32),   # match accumulator
            ],
        ),
        compiler_params=pltpu.CompilerParams(
            dimension_semantics=("parallel", "arbitrary"),
            vmem_limit_bytes=48 * 1024 * 1024,        # headroom, safe on v5e/v6e/v7x
        ),
    )(x, x)

    # Tiny O(2N) reduction; kept outside so the row axis stays "parallel".
    return jnp.mean(out[:two_n, 0])


def _reference_loss(xi, xj, tau=1.0, normalize=False):
    """Pure-JAX reference reproducing the PyTorch forward exactly."""
    x = jnp.concatenate([xi, xj], axis=0)
    sim = x @ x.T
    if normalize:
        nrm = jnp.linalg.norm(x, axis=1, keepdims=True)
        sim = sim / jnp.maximum(nrm @ nrm.T, 1e-16)
    sim = jnp.exp(sim / tau)
    match = jnp.sum(xi * xj, axis=-1)
    if normalize:
        match = match / (jnp.linalg.norm(xi, axis=1) * jnp.linalg.norm(xj, axis=1))
    sim_match = jnp.exp(match / tau)
    sim_match = jnp.concatenate([sim_match, sim_match], axis=0)
    norm_sum = jnp.exp(jnp.ones(x.shape[0]) / tau)
    return jnp.mean(-jnp.log(sim_match / (jnp.sum(sim, axis=-1) - norm_sum)))


if __name__ == "__main__":
    key = jax.random.PRNGKey(0)

    # --- small single-block case (batch 8, hidden 32) ---
    N, D = 8, 32
    k1, k2, k3, k4 = jax.random.split(key, 4)
    xi = jax.random.normal(k1, (N, D), dtype=jnp.float32) * 0.1
    xj = jax.random.normal(k2, (N, D), dtype=jnp.float32) * 0.1

    loss = contrastive_loss(xi, xj, tau=1.0, normalize=False)
    jax.block_until_ready(loss)
    ref = _reference_loss(xi, xj, tau=1.0, normalize=False)
    assert jnp.allclose(loss, ref, rtol=1e-5, atol=1e-5), (loss, ref)

    loss_n = contrastive_loss(xi, xj, tau=0.5, normalize=True)
    jax.block_until_ready(loss_n)
    ref_n = _reference_loss(xi, xj, tau=0.5, normalize=True)
    assert jnp.allclose(loss_n, ref_n, rtol=1e-5, atol=1e-5), (loss_n, ref_n)

    # --- multi-tile case (exercises the grid, accumulators and column padding) ---
    N2, D2 = 192, 64            # 2N = 384 -> padded to 512, grid (2, 2)
    xi2 = jax.random.normal(k3, (N2, D2), dtype=jnp.float32) * 0.1
    xj2 = jax.random.normal(k4, (N2, D2), dtype=jnp.float32) * 0.1

    loss2 = contrastive_loss(xi2, xj2, tau=1.0, normalize=False)
    jax.block_until_ready(loss2)
    ref2 = _reference_loss(xi2, xj2, tau=1.0, normalize=False)
    assert jnp.allclose(loss2, ref2, rtol=1e-4, atol=1e-4), (loss2, ref2)

    loss2_n = contrastive_loss(xi2, xj2, tau=0.5, normalize=True)
    jax.block_until_ready(loss2_n)
    ref2_n = _reference_loss(xi2, xj2, tau=0.5, normalize=True)
    assert jnp.allclose(loss2_n, ref2_n, rtol=1e-4, atol=1e-4), (loss2_n, ref2_n)

    print("KERNEL_OK")
</pallas_src>

<mosaic_0001>
module attributes {stable_mosaic.version = 11 : i64} {
  func.func @_contrastive_loss_kernel(%arg0: i32, %arg1: i32, %arg2: memref<16x32xf32, #tpu.memory_space<vmem>>, %arg3: memref<16x32xf32, #tpu.memory_space<vmem>>, %arg4: memref<16x1xf32, #tpu.memory_space<vmem>>, %arg5: memref<16x1xf32, #tpu.memory_space<vmem>>, %arg6: memref<16x1xf32, #tpu.memory_space<vmem>>) attributes {dimension_semantics = [#tpu.dimension_semantics<parallel>, #tpu.dimension_semantics<arbitrary>], iteration_bounds = array<i64: 1, 1>, scalar_prefetch = 0 : i64, scratch_operands = 2 : i64, tpu.core_type = #tpu.core_type<tc>, window_params = [{transform_indices = @transform_0, window_bounds = array<i64: 16, 32>}, {transform_indices = @transform_1, window_bounds = array<i64: 16, 32>}, {transform_indices = @transform_2, window_bounds = array<i64: 16, 1>}]} {
    %c0_i32 = arith.constant 0 : i32
    %0 = arith.cmpi eq, %arg1, %c0_i32 : i32
    %1 = arith.extui %0 : i1 to i32
    %c0_i32_0 = arith.constant 0 : i32
    %2 = arith.cmpi ne, %1, %c0_i32_0 : i32
    scf.if %2 {
      %cst_23 = arith.constant 0.000000e+00 : f32
      %44 = vector.broadcast %cst_23 : f32 to vector<16x1xf32>
      %c0_24 = arith.constant 0 : index
      %c0_25 = arith.constant 0 : index
      %45 = vector.load %arg5[%c0_24, %c0_25] : memref<16x1xf32, #tpu.memory_space<vmem>>, vector<16x1xf32>
      tpu.vector_store %arg5[%c0_24, %c0_25], %44 {strides = array<i32>} : memref<16x1xf32, #tpu.memory_space<vmem>>, vector<16x1xf32>,
      %cst_26 = arith.constant 0.000000e+00 : f32
      %46 = vector.broadcast %cst_26 : f32 to vector<16x1xf32>
      %c0_27 = arith.constant 0 : index
      %c0_28 = arith.constant 0 : index
      %47 = vector.load %arg6[%c0_27, %c0_28] : memref<16x1xf32, #tpu.memory_space<vmem>>, vector<16x1xf32>
      tpu.vector_store %arg6[%c0_27, %c0_28], %46 {strides = array<i32>} : memref<16x1xf32, #tpu.memory_space<vmem>>, vector<16x1xf32>,
    } else {
    }
    %c0 = arith.constant 0 : index
    %c0_1 = arith.constant 0 : index
    %3 = vector.load %arg2[%c0, %c0_1] : memref<16x32xf32, #tpu.memory_space<vmem>>, vector<16x32xf32>
    %c0_2 = arith.constant 0 : index
    %c0_3 = arith.constant 0 : index
    %4 = vector.load %arg3[%c0_2, %c0_3] : memref<16x32xf32, #tpu.memory_space<vmem>>, vector<16x32xf32>
    %cst = arith.constant dense<0.000000e+00> : vector<16x16xf32>
    %5 = tpu.matmul %3, %4, %cst {dimension_numbers = #tpu.dot_dimension_numbers<[1], [1], [0], [0], [0, 0, 1, 0], [], []>} : vector<16x32xf32>, vector<16x32xf32>, vector<16x16xf32> -> vector<16x16xf32>
    %cst_4 = arith.constant 1.000000e+00 : f32
    %6 = vector.broadcast %cst_4 : f32 to vector<16x16xf32>
    %7 = arith.mulf %5, %6 : vector<16x16xf32>
    %8 = tpu.iota {dimensions = array<i32: 0>} : vector<16x16xi32>
    %c16_i32 = arith.constant 16 : i32
    %9 = arith.muli %arg0, %c16_i32 : i32
    %10 = vector.broadcast %9 : i32 to vector<16x16xi32>
    %11 = arith.addi %8, %10 : vector<16x16xi32>
    %12 = tpu.iota {dimensions = array<i32: 1>} : vector<16x16xi32>
    %c16_i32_5 = arith.constant 16 : i32
    %13 = arith.muli %arg1, %c16_i32_5 : i32
    %14 = vector.broadcast %13 : i32 to vector<16x16xi32>
    %15 = arith.addi %12, %14 : vector<16x16xi32>
    %c16_i32_6 = arith.constant 16 : i32
    %16 = vector.broadcast %c16_i32_6 : i32 to vector<16x16xi32>
    %17 = arith.cmpi slt, %15, %16 : vector<16x16xi32>
    %c0_7 = arith.constant 0 : index
    %c0_8 = arith.constant 0 : index
    %18 = vector.load %arg5[%c0_7, %c0_8] : memref<16x1xf32, #tpu.memory_space<vmem>>, vector<16x1xf32>
    %19 = math.exp %7 : vector<16x16xf32>
    %cst_9 = arith.constant 0.000000e+00 : f32
    %20 = vector.broadcast %cst_9 : f32 to vector<16x16xf32>
    %21 = arith.select %17, %19, %20 : vector<16x16xi1>, vector<16x16xf32>
    %cst_10 = arith.constant dense<0.000000e+00> : vector<16xf32>
    %22 = vector.multi_reduction <add>, %21, %cst_10 [1] : vector<16x16xf32> to vector<16xf32>
    %23 = vector.shape_cast %22 : vector<16xf32> to vector<16x1xf32>
    %24 = arith.addf %18, %23 : vector<16x1xf32>
    %c0_11 = arith.constant 0 : index
    %c0_12 = arith.constant 0 : index
    %25 = vector.load %arg5[%c0_11, %c0_12] : memref<16x1xf32, #tpu.memory_space<vmem>>, vector<16x1xf32>
    tpu.vector_store %arg5[%c0_11, %c0_12], %24 {strides = array<i32>} : memref<16x1xf32, #tpu.memory_space<vmem>>, vector<16x1xf32>,
    %c8_i32 = arith.constant 8 : i32
    %26 = vector.broadcast %c8_i32 : i32 to vector<16x16xi32>
    %27 = arith.cmpi slt, %11, %26 : vector<16x16xi32>
    %c8_i32_13 = arith.constant 8 : i32
    %28 = vector.broadcast %c8_i32_13 : i32 to vector<16x16xi32>
    %29 = arith.addi %11, %28 : vector<16x16xi32>
    %c8_i32_14 = arith.constant 8 : i32
    %30 = vector.broadcast %c8_i32_14 : i32 to vector<16x16xi32>
    %31 = arith.subi %11, %30 : vector<16x16xi32>
    %32 = arith.select %27, %29, %31 : vector<16x16xi1>, vector<16x16xi32>
    %c0_15 = arith.constant 0 : index
    %c0_16 = arith.constant 0 : index
    %33 = vector.load %arg6[%c0_15, %c0_16] : memref<16x1xf32, #tpu.memory_space<vmem>>, vector<16x1xf32>
    %34 = arith.cmpi eq, %15, %32 : vector<16x16xi32>
    %cst_17 = arith.constant 0.000000e+00 : f32
    %35 = vector.broadcast %cst_17 : f32 to vector<16x16xf32>
    %36 = arith.select %34, %7, %35 : vector<16x16xi1>, vector<16x16xf32>
    %cst_18 = arith.constant dense<0.000000e+00> : vector<16xf32>
    %37 = vector.multi_reduction <add>, %36, %cst_18 [1] : vector<16x16xf32> to vector<16xf32>
    %38 = vector.shape_cast %37 : vector<16xf32> to vector<16x1xf32>
    %39 = arith.addf %33, %38 : vector<16x1xf32>
    %c0_19 = arith.constant 0 : index
    %c0_20 = arith.constant 0 : index
    %40 = vector.load %arg6[%c0_19, %c0_20] : memref<16x1xf32, #tpu.memory_space<vmem>>, vector<16x1xf32>
    tpu.vector_store %arg6[%c0_19, %c0_20], %39 {strides = array<i32>} : memref<16x1xf32, #tpu.memory_space<vmem>>, vector<16x1xf32>,
    %c0_i32_21 = arith.constant 0 : i32
    %41 = arith.cmpi eq, %arg1, %c0_i32_21 : i32
    %42 = arith.extui %41 : i1 to i32
    %c0_i32_22 = arith.constant 0 : i32
    %43 = arith.cmpi ne, %42, %c0_i32_22 : i32
    scf.if %43 {
      %c0_23 = arith.constant 0 : index
      %c0_24 = arith.constant 0 : index
      %44 = vector.load %arg5[%c0_23, %c0_24] : memref<16x1xf32, #tpu.memory_space<vmem>>, vector<16x1xf32>
      %cst_25 = arith.constant 2.71828175 : f32
      %45 = vector.broadcast %cst_25 : f32 to vector<16x1xf32>
      %46 = arith.subf %44, %45 : vector<16x1xf32>
      %47 = math.log %46 : vector<16x1xf32>
      %c0_26 = arith.constant 0 : index
      %c0_27 = arith.constant 0 : index
      %48 = vector.load %arg6[%c0_26, %c0_27] : memref<16x1xf32, #tpu.memory_space<vmem>>, vector<16x1xf32>
      %49 = arith.subf %47, %48 : vector<16x1xf32>
      %c0_28 = arith.constant 0 : index
      %c0_29 = arith.constant 0 : index
      %50 = vector.load %arg4[%c0_28, %c0_29] : memref<16x1xf32, #tpu.memory_space<vmem>>, vector<16x1xf32>
      tpu.vector_store %arg4[%c0_28, %c0_29], %49 {strides = array<i32>} : memref<16x1xf32, #tpu.memory_space<vmem>>, vector<16x1xf32>,
    } else {
    }
    return
  }
  func.func @transform_0(%arg0: i32, %arg1: i32) -> (i32, i32) {
    %c0_i32 = arith.constant 0 : i32
    %c0_i32_0 = arith.constant 0 : i32
    return %arg0, %c0_i32 : i32, i32
  }
  func.func @transform_1(%arg0: i32, %arg1: i32) -> (i32, i32) {
    %c0_i32 = arith.constant 0 : i32
    %c0_i32_0 = arith.constant 0 : i32
    return %arg1, %c0_i32 : i32, i32
  }
  func.func @transform_2(%arg0: i32, %arg1: i32) -> (i32, i32) {
    %c0_i32 = arith.constant 0 : i32
    %c0_i32_0 = arith.constant 0 : i32
    return %arg0, %c0_i32 : i32, i32
  }
}

</mosaic_0001>

<bundles_post_ra>
// kernel: tpu_custom_call.1
= control target key start
LH: loop header
LB: loop body
LE: loop exit
PB: predicated region body
PF: predicated region fallthrough
CT: control target
= control target key end

     0   :  { %7 = vsyncpa [#allocation5], 0  ;;  %s293_s0 = inlined_call_operand.hbm [shape: f32[16,32], index: 0, kind: input, shape index: {}]   ;;  %s294_s1 = inlined_call_operand.hbm [shape: f32[16,32], index: 1, kind: input, shape index: {}]   ;;  %s295_s2 = inlined_call_operand.vmem [shape: f32[16,1], index: 2, kind: output, shape index: {}]  }
   0x1   :  { %s13_s11 = sshll.u32 %s293_s0, 4  ;;  %s14_s11 = int_to_ptr.hbm [resolvable:$true] %s13_s11 }
   0x2   :  { %8 = vsyncpa [#allocation7], 0  ;;  %s247_s12 = smov [#allocation4]   ;;  %s26_s16 = sshll.u32 %s294_s1, 4  ;;  %s27_s16 = int_to_ptr.hbm [resolvable:$true] %s26_s16 }
   0x3   :  { %s15_s13 = sshll.u32 %s247_s12, 4  ;;  %s248_s17 = smov 128   ;;  %s16_s13 = int_to_ptr.vmem [resolvable:$true] %s15_s13 }
   0x4   :  { %s249_s18 = smov 8   ;;  %s250_s19 = smov [#allocation6]  }
   0x5   :  { %21 = dma.hbm_to_vmem [thread:$0]  %s14_s11, 256, %s16_s13, [#allocation5], %s248_s17, %s248_s17, %s249_s18  }
   0x6   :  { %s28_s20 = sshll.u32 %s250_s19, 4  ;;  %s29_s20 = int_to_ptr.vmem [resolvable:$true] %s28_s20 }
   0x7   :  { %34 = dma.hbm_to_vmem [thread:$0]  %s27_s16, 256, %s29_s20, [#allocation7], %s248_s17, %s248_s17, %s249_s18  }
   0x8   :  { %243 = dma.done.wait [#allocation5], 256  }
   0x9   :  { %244 = vsyncadd [#allocation5], 4294967040 }
   0xa   :  { %245 = dma.done.wait [#allocation7], 256  }
   0xb   :  { %246 = vsyncadd [#allocation7], 4294967040  ;;  %vm56_vm0 = vcmask 261120   ;;  %v55_v0 = vld [vmem:[#allocation6 + $0x8] sm:$0xff]  ;;  %v54_v1 = vld [vmem:[#allocation6] sm:$0xff]  ;;  %v92_v4 = vlaneseq  ;;  %vm47_vm1 = vcmask 7168  }
   0xc   :  { %172 = vmatpush.xpose.msk.msra.mxu0 %vm56_vm0, %v55_v0  ;;  %180 = vmatpush.xpose.msk.msra.mxu1 %vm56_vm0, %v55_v0  ;;  %v52_v2 = vld [vmem:[#allocation4] sm:$0xff]  ;;  %v53_v3 = vld [vmem:[#allocation4 + $0x8] sm:$0xff]  ;;  %v251_v5 = vmov 0.0   ;;  %vm113_vm3 = vcmask 130048  }
   0xd   :  { %50 = vst.msk [vmem:[#allocation3] sm:$0xff] %vm47_vm1, %v251_v5  ;;  %v93_v6 = vshrl.u32 %v92_v4, 7  ;;  %v100_v8 = vand.u32 127, %v92_v4 }
   0xe   :  { %48 = vst.msk [vmem:[#allocation2] sm:$0xff] %vm47_vm1, %v251_v5 }
   0xf   :  { %49 = vst.msk [vmem:[#allocation2 + $0x8] sm:$0xff] %vm47_vm1, %v251_v5  ;;  %v94_v7 = vadd.s32 8, %v93_v6  ;;  %vm104_vm5 = vcmp.lt.s32.totalorder %v100_v8, 16 }
  0x10   :  { %173 = vmatpush.xpose.msk.msra.mxu0 %vm56_vm0, %v54_v1  ;;  %181 = vmatpush.xpose.msk.msra.mxu1 %vm56_vm0, %v54_v1  ;;  %51 = vst.msk [vmem:[#allocation3 + $0x8] sm:$0xff] %vm47_vm1, %v251_v5 }
  0x11   :  { %vm135_vm2 = vcmp.eq.s32.totalorder %v100_v8, %v94_v7  ;;  %v177_v9 = vadd.s32 4294967288, %v94_v7 }
  0x13   :  { %174 = vmatmul.msk.f32.vlgmr.msra.gmra.mxu0 %vm56_vm0, %v52_v2  ;;  %175 = vmatmul.msk.f32.vlgmr.msra.gmra.mxu1 %vm56_vm0, %v53_v3  ;;  %vm136_vm4 = vcmp.eq.s32.totalorder %v100_v8, %v177_v9 }
  0x14   :  { %v133_v24 = vld [vmem:[#allocation3] sm:$0xff] }
  0x15   :  { %v105_v28 = vld [vmem:[#allocation2] sm:$0xff] }
  0x16   :  { %v106_v33 = vld [vmem:[#allocation2 + $0x8] sm:$0xff] }
  0x17   :  { %v134_v27 = vld [vmem:[#allocation3 + $0x8] sm:$0xff] }
  0x90   :  { %v86_v10 = vpop.f32.mrf.mxu0  ;;  %v89_v11 = vpop.f32.mrf.mxu1 }
  0x91   :  { %v107_v12 = vmul.f32 1.442695, %v86_v10  ;;  %v137_v13 = vsel %vm135_vm2, %v86_v10, 0.0  ;;  %v109_v14 = vmul.f32 1.442695, %v89_v11  ;;  %v138_v16 = vsel %vm136_vm4, %v89_v11, 0.0 }
  0x92   :  { %v139_v15 = vsel %vm113_vm3, %v137_v13, 0.0  ;;  %v142_v17 = vsel %vm113_vm3, %v138_v16, 0.0 }
  0x93   :  { %187 = vpow2.f32 %v107_v12  ;;  %140 = vadd.xlane.f32.xlu1 %v139_v15 }
  0x94   :  { %189 = vpow2.f32 %v109_v14 }
  0x99   :  { %v188_v18 = vpop.eup %187 }
  0x9a   :  { %v111_v19 = vsel %vm104_vm5, %v188_v18, 0.0  ;;  %v190_v20 = vpop.eup %189 }
  0x9b   :  { %143 = vadd.xlane.f32.xlu1 %v142_v17  ;;  %v114_v21 = vsel %vm113_vm3, %v111_v19, 0.0  ;;  %v112_v22 = vsel %vm104_vm5, %v190_v20, 0.0 }
  0x9c   :  { %115 = vadd.xlane.f32.xlu0 %v114_v21  ;;  %v117_v23 = vsel %vm113_vm3, %v112_v22, 0.0 }
  0xa4   :  { %118 = vadd.xlane.f32.xlu0 %v117_v23 }
 0x106   :  { %v141_v25 = vpop.xlane.xlu1 %140 }
 0x107   :  { %v145_v26 = vadd.f32 %v141_v25, %v133_v24 }
 0x109   :  { %147 = vst.msk [vmem:[#allocation3] sm:$0xff] %vm47_vm1, %v145_v26 }
 0x10e   :  { %v144_v29 = vpop.xlane.xlu1 %143 }
 0x10f   :  { %v146_v30 = vadd.f32 %v144_v29, %v134_v27  ;;  %v116_v31 = vpop.xlane.xlu0 %115 }
 0x110   :  { %v120_v32 = vadd.f32 %v116_v31, %v105_v28  ;;  %v160_v42 = vld [vmem:[#allocation3] sm:$0xff] }
 0x111   :  { %148 = vst.msk [vmem:[#allocation3 + $0x8] sm:$0xff] %vm47_vm1, %v146_v30 }
 0x112   :  { %123 = vst.msk [vmem:[#allocation2] sm:$0xff] %vm47_vm1, %v120_v32 }
 0x117   :  { %v119_v34 = vpop.xlane.xlu0 %118 }
 0x118   :  { %v121_v35 = vadd.f32 %v119_v34, %v106_v33  ;;  %v161_v46 = vld [vmem:[#allocation3 + $0x8] sm:$0xff] }
 0x119   :  { %v152_v36 = vld [vmem:[#allocation2] sm:$0xff] }
 0x11a   :  { %v178_v37 = vadd.f32 -2.7182817, %v152_v36  ;;  %124 = vst.msk [vmem:[#allocation2 + $0x8] sm:$0xff] %vm47_vm1, %v121_v35 }
 0x11c   :  { %191 = vlog2.f32 %v178_v37 }
 0x121   :  { %v153_v38 = vld [vmem:[#allocation2 + $0x8] sm:$0xff] }
 0x122   :  { %v192_v39 = vpop.eup %191  ;;  %v179_v40 = vadd.f32 -2.7182817, %v153_v38 }
 0x123   :  { %v157_v41 = vmul.f32 0.6931472, %v192_v39 }
 0x124   :  { %193 = vlog2.f32 %v179_v40 }
 0x125   :  { %v162_v43 = vsub.f32 %v157_v41, %v160_v42 }
 0x127   :  { %164 = vst.msk [vmem:[%s295_s2] sm:$0xff] %vm47_vm1, %v162_v43 }
 0x12a   :  { %v194_v44 = vpop.eup %193 }
 0x12b   :  { %v159_v45 = vmul.f32 0.6931472, %v194_v44 }
 0x12d   :  { %v163_v47 = vsub.f32 %v159_v45, %v161_v46 }
 0x12f   :  { %165 = vst.msk [vmem:[%s295_s2 + $0x8] sm:$0xff] %vm47_vm1, %v163_v47 }
 0x130   :  { %170 = vsyncpa [#allocation5], 1 }
 0x131   :  { %171 = vsyncpa [#allocation7], 1 }

</bundles_post_ra>
